<compile_context>
chip_gen: v7x
topology: tpu7x:2x2x1
jax: 0.10.0
libtpu: 0.0.40
codegen_flags: <defaults>
</compile_context>

<pallas_src>
import jax
import jax.numpy as jnp
from jax.experimental import pallas as pl
from jax.experimental.pallas import tpu as pltpu


def _leaky_relu(x, negative_slope=0.1):
    return jnp.where(x > 0, x, negative_slope * x)


def mlp_kernel(x_ref,
               w1_ref, b1_ref,
               w2_ref, b2_ref,
               w3_ref, b3_ref,
               w4_ref, b4_ref,
               o_ref):
    # In-kernel f32 -> bf16 cast (free VPU work; halves input-side HBM bytes
    # vs. a wrapper-side cast). f32 accumulation, f32 bias/LeakyReLU epilogue.
    x = x_ref[...].astype(jnp.bfloat16)

    h = jnp.dot(x, w1_ref[...], preferred_element_type=jnp.float32) + b1_ref[...]
    h = _leaky_relu(h)

    h = jnp.dot(h.astype(jnp.bfloat16), w2_ref[...],
                preferred_element_type=jnp.float32) + b2_ref[...]
    h = _leaky_relu(h)

    h = jnp.dot(h.astype(jnp.bfloat16), w3_ref[...],
                preferred_element_type=jnp.float32) + b3_ref[...]
    h = _leaky_relu(h)

    h = jnp.dot(h.astype(jnp.bfloat16), w4_ref[...],
                preferred_element_type=jnp.float32) + b4_ref[...]

    o_ref[...] = h.astype(o_ref.dtype)


def prepare_params(params):
    """One-time cast: bf16 MXU weights, f32 (1, n) biases for the epilogue."""
    prep = {}
    for i in range(1, 5):
        prep[f"w{i}"] = params[f"w{i}"].astype(jnp.bfloat16)
        prep[f"b{i}"] = params[f"b{i}"].reshape(1, -1).astype(jnp.float32)
    return prep


def _choose_tile(batch, tm):
    rounded = max(8, ((batch + 7) // 8) * 8)
    tm = max(8, min(tm, rounded))
    tm = ((tm + 7) // 8) * 8
    # v7x: make sure large batches produce >=2 grid steps so both TensorCores
    # get work; no effect on v5e/v6e (single TC).
    if rounded >= 512 and pl.cdiv(batch, tm) < 2:
        tm = ((pl.cdiv(rounded, 2) + 7) // 8) * 8
    return tm


def neural_net_forward(x, prepared, *, tm=1024):
    """x: (batch, input_size) f32.  prepared: output of prepare_params()."""
    batch, input_size = x.shape
    h1 = prepared["w1"].shape[1]
    h2 = prepared["w2"].shape[1]
    h3 = prepared["w3"].shape[1]
    out_size = prepared["w4"].shape[1]

    tm = _choose_tile(batch, tm)
    grid = (pl.cdiv(batch, tm),)

    args = (x,
            prepared["w1"], prepared["b1"],
            prepared["w2"], prepared["b2"],
            prepared["w3"], prepared["b3"],
            prepared["w4"], prepared["b4"])

    # x / out tiled over the batch (boundary blocks handle ragged last tile:
    # rows are independent, OOB output rows are never written back).
    # Weights/biases use constant block indices -> VMEM-resident across steps.
    in_specs = [pl.BlockSpec((tm, input_size), lambda i: (i, 0))]
    in_specs += [pl.BlockSpec(a.shape, lambda i: (0, 0)) for a in args[1:]]
    out_specs = pl.BlockSpec((tm, out_size), lambda i: (i, 0))

    # Advisory cost estimate for XLA's scheduler.
    flops = 2 * batch * (input_size * h1 + h1 * h2 + h2 * h3 + h3 * out_size)
    bytes_accessed = (
        x.size * 4
        + sum(prepared[f"w{i}"].size for i in range(1, 5)) * 2
        + sum(prepared[f"b{i}"].size for i in range(1, 5)) * 4
        + batch * out_size * 4
    )
    cost = pl.CostEstimate(flops=flops, transcendentals=0,
                           bytes_accessed=bytes_accessed)

    out = pl.pallas_call(
        mlp_kernel,
        out_shape=jax.ShapeDtypeStruct((batch, out_size), jnp.float32),
        grid=grid,
        in_specs=in_specs,
        out_specs=out_specs,
        compiler_params=pltpu.CompilerParams(
            dimension_semantics=("parallel",)),
        cost_estimate=cost,
    )(*args)

    return out  # no wrapper slicing: output is already (batch, out_size)


def init_params(key, input_size, h1, h2, h3, output_size):
    """Deterministic init mimicking nn.Linear's U(-1/sqrt(fan_in), 1/sqrt(fan_in)).

    Weights are stored already transposed to [in_features, out_features].
    """
    dims = [(input_size, h1), (h1, h2), (h2, h3), (h3, output_size)]
    params = {}
    keys = jax.random.split(key, 2 * len(dims))
    for i, (fan_in, fan_out) in enumerate(dims):
        bound = 1.0 / (fan_in ** 0.5)
        wk, bk = keys[2 * i], keys[2 * i + 1]
        params[f"w{i+1}"] = jax.random.uniform(
            wk, (fan_in, fan_out), jnp.float32, -bound, bound)
        params[f"b{i+1}"] = jax.random.uniform(
            bk, (fan_out,), jnp.float32, -bound, bound)
    return params


def reference_forward(x, params):
    """Pure-JAX f32 reference (same semantics as the PyTorch module)."""
    h = x @ params["w1"] + params["b1"]
    h = jnp.where(h > 0, h, 0.1 * h)
    h = h @ params["w2"] + params["b2"]
    h = jnp.where(h > 0, h, 0.1 * h)
    h = h @ params["w3"] + params["b3"]
    h = jnp.where(h > 0, h, 0.1 * h)
    return h @ params["w4"] + params["b4"]


if __name__ == "__main__":
    input_size, h1, h2, h3, output_size = 32, 64, 64, 32, 16

    key = jax.random.PRNGKey(0)
    k_params, k_x1, k_x2 = jax.random.split(key, 3)
    params = init_params(k_params, input_size, h1, h2, h3, output_size)
    prepared = prepare_params(params)   # one-time bf16/f32 cast of weights

    # Primary small-batch check (single grid step).
    batch = 8
    x = jax.random.normal(k_x1, (batch, input_size), jnp.float32)
    out = jax.block_until_ready(neural_net_forward(x, prepared))
    ref = reference_forward(x, params)
    assert out.shape == (batch, output_size)
    # bf16 MXU operands -> loosened tolerance vs the f32 reference.
    assert jnp.allclose(out, ref, atol=5e-2, rtol=5e-2)

    # Second check: multiple grid steps + ragged boundary block (300 % 128 != 0).
    batch2 = 300
    x2 = jax.random.normal(k_x2, (batch2, input_size), jnp.float32)
    out2 = jax.block_until_ready(neural_net_forward(x2, prepared, tm=128))
    ref2 = reference_forward(x2, params)
    assert out2.shape == (batch2, output_size)
    assert jnp.allclose(out2, ref2, atol=5e-2, rtol=5e-2)

    print("KERNEL_OK")
</pallas_src>

<mosaic_0001>
module attributes {stable_mosaic.version = 11 : i64} {
  func.func @mlp_kernel(%arg0: i32, %arg1: memref<8x32xf32, #tpu.memory_space<vmem>>, %arg2: memref<32x64xbf16, #tpu.memory_space<vmem>>, %arg3: memref<1x64xf32, #tpu.memory_space<vmem>>, %arg4: memref<64x64xbf16, #tpu.memory_space<vmem>>, %arg5: memref<1x64xf32, #tpu.memory_space<vmem>>, %arg6: memref<64x32xbf16, #tpu.memory_space<vmem>>, %arg7: memref<1x32xf32, #tpu.memory_space<vmem>>, %arg8: memref<32x16xbf16, #tpu.memory_space<vmem>>, %arg9: memref<1x16xf32, #tpu.memory_space<vmem>>, %arg10: memref<8x16xf32, #tpu.memory_space<vmem>>) attributes {dimension_semantics = [#tpu.dimension_semantics<parallel>], iteration_bounds = array<i64: 1>, scalar_prefetch = 0 : i64, scratch_operands = 0 : i64, tpu.core_type = #tpu.core_type<tc>, window_params = [{transform_indices = @transform_0, window_bounds = array<i64: 8, 32>}, {pipeline_mode = #tpu.pipeline_mode<synchronous>, transform_indices = @transform_1, window_bounds = array<i64: 32, 64>}, {pipeline_mode = #tpu.pipeline_mode<synchronous>, transform_indices = @transform_2, window_bounds = array<i64: 1, 64>}, {pipeline_mode = #tpu.pipeline_mode<synchronous>, transform_indices = @transform_3, window_bounds = array<i64: 64, 64>}, {pipeline_mode = #tpu.pipeline_mode<synchronous>, transform_indices = @transform_4, window_bounds = array<i64: 1, 64>}, {pipeline_mode = #tpu.pipeline_mode<synchronous>, transform_indices = @transform_5, window_bounds = array<i64: 64, 32>}, {pipeline_mode = #tpu.pipeline_mode<synchronous>, transform_indices = @transform_6, window_bounds = array<i64: 1, 32>}, {pipeline_mode = #tpu.pipeline_mode<synchronous>, transform_indices = @transform_7, window_bounds = array<i64: 32, 16>}, {pipeline_mode = #tpu.pipeline_mode<synchronous>, transform_indices = @transform_8, window_bounds = array<i64: 1, 16>}, {transform_indices = @transform_9, window_bounds = array<i64: 8, 16>}]} {
    %c0 = arith.constant 0 : index
    %c0_0 = arith.constant 0 : index
    %0 = vector.load %arg1[%c0, %c0_0] : memref<8x32xf32, #tpu.memory_space<vmem>>, vector<8x32xf32>
    %1 = arith.truncf %0 : vector<8x32xf32> to vector<8x32xbf16>
    %c0_1 = arith.constant 0 : index
    %c0_2 = arith.constant 0 : index
    %2 = vector.load %arg2[%c0_1, %c0_2] : memref<32x64xbf16, #tpu.memory_space<vmem>>, vector<32x64xbf16>
    %cst = arith.constant dense<0.000000e+00> : vector<8x64xf32>
    %3 = tpu.matmul %1, %2, %cst {dimension_numbers = #tpu.dot_dimension_numbers<[1], [0], [0], [1], [0, 0, 1, 1], [], []>} : vector<8x32xbf16>, vector<32x64xbf16>, vector<8x64xf32> -> vector<8x64xf32>
    %c0_3 = arith.constant 0 : index
    %c0_4 = arith.constant 0 : index
    %4 = vector.load %arg3[%c0_3, %c0_4] : memref<1x64xf32, #tpu.memory_space<vmem>>, vector<1x64xf32>
    %5 = vector.broadcast %4 : vector<1x64xf32> to vector<8x64xf32>
    %6 = arith.addf %3, %5 : vector<8x64xf32>
    %cst_5 = arith.constant 0.000000e+00 : f32
    %7 = vector.broadcast %cst_5 : f32 to vector<8x64xf32>
    %8 = arith.cmpf ogt, %6, %7 : vector<8x64xf32>
    %cst_6 = arith.constant 1.000000e-01 : f32
    %9 = vector.broadcast %cst_6 : f32 to vector<8x64xf32>
    %10 = arith.mulf %9, %6 : vector<8x64xf32>
    %11 = arith.select %8, %6, %10 : vector<8x64xi1>, vector<8x64xf32>
    %12 = arith.truncf %11 : vector<8x64xf32> to vector<8x64xbf16>
    %c0_7 = arith.constant 0 : index
    %c0_8 = arith.constant 0 : index
    %13 = vector.load %arg4[%c0_7, %c0_8] : memref<64x64xbf16, #tpu.memory_space<vmem>>, vector<64x64xbf16>
    %cst_9 = arith.constant dense<0.000000e+00> : vector<8x64xf32>
    %14 = tpu.matmul %12, %13, %cst_9 {dimension_numbers = #tpu.dot_dimension_numbers<[1], [0], [0], [1], [0, 0, 1, 1], [], []>} : vector<8x64xbf16>, vector<64x64xbf16>, vector<8x64xf32> -> vector<8x64xf32>
    %c0_10 = arith.constant 0 : index
    %c0_11 = arith.constant 0 : index
    %15 = vector.load %arg5[%c0_10, %c0_11] : memref<1x64xf32, #tpu.memory_space<vmem>>, vector<1x64xf32>
    %16 = vector.broadcast %15 : vector<1x64xf32> to vector<8x64xf32>
    %17 = arith.addf %14, %16 : vector<8x64xf32>
    %cst_12 = arith.constant 0.000000e+00 : f32
    %18 = vector.broadcast %cst_12 : f32 to vector<8x64xf32>
    %19 = arith.cmpf ogt, %17, %18 : vector<8x64xf32>
    %cst_13 = arith.constant 1.000000e-01 : f32
    %20 = vector.broadcast %cst_13 : f32 to vector<8x64xf32>
    %21 = arith.mulf %20, %17 : vector<8x64xf32>
    %22 = arith.select %19, %17, %21 : vector<8x64xi1>, vector<8x64xf32>
    %23 = arith.truncf %22 : vector<8x64xf32> to vector<8x64xbf16>
    %c0_14 = arith.constant 0 : index
    %c0_15 = arith.constant 0 : index
    %24 = vector.load %arg6[%c0_14, %c0_15] : memref<64x32xbf16, #tpu.memory_space<vmem>>, vector<64x32xbf16>
    %cst_16 = arith.constant dense<0.000000e+00> : vector<8x32xf32>
    %25 = tpu.matmul %23, %24, %cst_16 {dimension_numbers = #tpu.dot_dimension_numbers<[1], [0], [0], [1], [0, 0, 1, 1], [], []>} : vector<8x64xbf16>, vector<64x32xbf16>, vector<8x32xf32> -> vector<8x32xf32>
    %c0_17 = arith.constant 0 : index
    %c0_18 = arith.constant 0 : index
    %26 = vector.load %arg7[%c0_17, %c0_18] : memref<1x32xf32, #tpu.memory_space<vmem>>, vector<1x32xf32>
    %27 = vector.broadcast %26 : vector<1x32xf32> to vector<8x32xf32>
    %28 = arith.addf %25, %27 : vector<8x32xf32>
    %cst_19 = arith.constant 0.000000e+00 : f32
    %29 = vector.broadcast %cst_19 : f32 to vector<8x32xf32>
    %30 = arith.cmpf ogt, %28, %29 : vector<8x32xf32>
    %cst_20 = arith.constant 1.000000e-01 : f32
    %31 = vector.broadcast %cst_20 : f32 to vector<8x32xf32>
    %32 = arith.mulf %31, %28 : vector<8x32xf32>
    %33 = arith.select %30, %28, %32 : vector<8x32xi1>, vector<8x32xf32>
    %34 = arith.truncf %33 : vector<8x32xf32> to vector<8x32xbf16>
    %c0_21 = arith.constant 0 : index
    %c0_22 = arith.constant 0 : index
    %35 = vector.load %arg8[%c0_21, %c0_22] : memref<32x16xbf16, #tpu.memory_space<vmem>>, vector<32x16xbf16>
    %cst_23 = arith.constant dense<0.000000e+00> : vector<8x16xf32>
    %36 = tpu.matmul %34, %35, %cst_23 {dimension_numbers = #tpu.dot_dimension_numbers<[1], [0], [0], [1], [0, 0, 1, 1], [], []>} : vector<8x32xbf16>, vector<32x16xbf16>, vector<8x16xf32> -> vector<8x16xf32>
    %c0_24 = arith.constant 0 : index
    %c0_25 = arith.constant 0 : index
    %37 = vector.load %arg9[%c0_24, %c0_25] : memref<1x16xf32, #tpu.memory_space<vmem>>, vector<1x16xf32>
    %38 = vector.broadcast %37 : vector<1x16xf32> to vector<8x16xf32>
    %39 = arith.addf %36, %38 : vector<8x16xf32>
    %c0_26 = arith.constant 0 : index
    %c0_27 = arith.constant 0 : index
    %40 = vector.load %arg10[%c0_26, %c0_27] : memref<8x16xf32, #tpu.memory_space<vmem>>, vector<8x16xf32>
    tpu.vector_store %arg10[%c0_26, %c0_27], %39 {strides = array<i32>} : memref<8x16xf32, #tpu.memory_space<vmem>>, vector<8x16xf32>,
    return
  }
  func.func @transform_0(%arg0: i32) -> (i32, i32) {
    %c0_i32 = arith.constant 0 : i32
    %c0_i32_0 = arith.constant 0 : i32
    return %arg0, %c0_i32 : i32, i32
  }
  func.func @transform_1(%arg0: i32) -> (i32, i32) {
    %c0_i32 = arith.constant 0 : i32
    %c0_i32_0 = arith.constant 0 : i32
    %c0_i32_1 = arith.constant 0 : i32
    return %c0_i32, %c0_i32_0 : i32, i32
  }
  func.func @transform_2(%arg0: i32) -> (i32, i32) {
    %c0_i32 = arith.constant 0 : i32
    %c0_i32_0 = arith.constant 0 : i32
    %c0_i32_1 = arith.constant 0 : i32
    return %c0_i32, %c0_i32_0 : i32, i32
  }
  func.func @transform_3(%arg0: i32) -> (i32, i32) {
    %c0_i32 = arith.constant 0 : i32
    %c0_i32_0 = arith.constant 0 : i32
    %c0_i32_1 = arith.constant 0 : i32
    return %c0_i32, %c0_i32_0 : i32, i32
  }
  func.func @transform_4(%arg0: i32) -> (i32, i32) {
    %c0_i32 = arith.constant 0 : i32
    %c0_i32_0 = arith.constant 0 : i32
    %c0_i32_1 = arith.constant 0 : i32
    return %c0_i32, %c0_i32_0 : i32, i32
  }
  func.func @transform_5(%arg0: i32) -> (i32, i32) {
    %c0_i32 = arith.constant 0 : i32
    %c0_i32_0 = arith.constant 0 : i32
    %c0_i32_1 = arith.constant 0 : i32
    return %c0_i32, %c0_i32_0 : i32, i32
  }
  func.func @transform_6(%arg0: i32) -> (i32, i32) {
    %c0_i32 = arith.constant 0 : i32
    %c0_i32_0 = arith.constant 0 : i32
    %c0_i32_1 = arith.constant 0 : i32
    return %c0_i32, %c0_i32_0 : i32, i32
  }
  func.func @transform_7(%arg0: i32) -> (i32, i32) {
    %c0_i32 = arith.constant 0 : i32
    %c0_i32_0 = arith.constant 0 : i32
    %c0_i32_1 = arith.constant 0 : i32
    return %c0_i32, %c0_i32_0 : i32, i32
  }
  func.func @transform_8(%arg0: i32) -> (i32, i32) {
    %c0_i32 = arith.constant 0 : i32
    %c0_i32_0 = arith.constant 0 : i32
    %c0_i32_1 = arith.constant 0 : i32
    return %c0_i32, %c0_i32_0 : i32, i32
  }
  func.func @transform_9(%arg0: i32) -> (i32, i32) {
    %c0_i32 = arith.constant 0 : i32
    %c0_i32_0 = arith.constant 0 : i32
    return %arg0, %c0_i32 : i32, i32
  }
}

</mosaic_0001>

<bundles_post_ra>
// kernel: tpu_custom_call.1
= control target key start
LH: loop header
LB: loop body
LE: loop exit
PB: predicated region body
PF: predicated region fallthrough
CT: control target
= control target key end

     0   :  { %v477_v1 = vmov 0.0   ;;  %vm478_vm0 = vmmov 0   ;;  %vm59_vm1 = vcmask 261120   ;;  %s617_s0 = inlined_call_operand.vmem [shape: f32[8,32], index: 0, kind: input, shape index: {}]   ;;  %s618_s1 = inlined_call_operand.vmem [shape: bf16[32,64], index: 1, kind: input, shape index: {}]   ;;  %s619_s2 = inlined_call_operand.vmem [shape: f32[1,64], index: 2, kind: input, shape index: {}]   ;;  %s620_s3 = inlined_call_operand.vmem [shape: bf16[64,64], index: 3, kind: input, shape index: {}]   ;;  %s621_s4 = inlined_call_operand.vmem [shape: f32[1,64], index: 4, kind: input, shape index: {}]   ;;  %s622_s5 = inlined_call_operand.vmem [shape: bf16[64,32], index: 5, kind: input, shape index: {}]   ;;  %s623_s6 = inlined_call_operand.vmem [shape: f32[1,32], index: 6, kind: input, shape index: {}]   ;;  %s624_s7 = inlined_call_operand.vmem [shape: bf16[32,16], index: 7, kind: input, shape index: {}]   ;;  %s625_s8 = inlined_call_operand.vmem [shape: f32[1,16], index: 8, kind: input, shape index: {}]   ;;  %s626_s9 = inlined_call_operand.hbm [shape: f32[8,16], index: 9, kind: output, shape index: {}]  }
   0x1   :  { %v441_v0 = vld [vmem:[%s618_s1] sm:$0xff]   ;;  %398 = vmatprep.subr.bf16.mxu0 %v477_v1  ;;  %v442_v2 = vld [vmem:[%s618_s1 + $0x8] sm:$0xff]   ;;  %406 = vmatprep.subr.bf16.mxu1 %v477_v1 }
   0x2   :  { %399 = vmatpush3.bf16.msra.mxu0 %v441_v0  ;;  %402 = vmatprep.mubr.msk.bf16.mxu0 %vm478_vm0, %v477_v1  ;;  %v34_v3 = vld [vmem:[%s617_s0] sm:$0xff]  ;;  %v444_v5 = vld [vmem:[%s620_s3 + $0x8] sm:$0xff]  }
   0x3   :  { %400 = vmatprep.subr.bf16.mxu0 %v477_v1  ;;  %v443_v4 = vld [vmem:[%s620_s3] sm:$0xff]   ;;  %414 = vmatprep.mubr.msk.bf16.mxu1 %vm478_vm0, %v477_v1  ;;  %v35_v6 = vpack.c.bf16 %v34_v3, %v34_v3 }
   0x4   :  { %407 = vmatpush3.bf16.msra.mxu1 %v443_v4 }
   0x5   :  { %408 = vmatprep.subr.bf16.mxu1 %v477_v1 }
   0x6   :  { %401 = vmatpush3.bf16.msra.mxu0 %v442_v2 }
   0x7   :  { %418 = vmatprep.subr.bf16.mxu0 %v477_v1 }
   0x8   :  { %409 = vmatpush3.bf16.msra.mxu1 %v444_v5 }
   0x9   :  { %403 = vmatmul.mubr.msk.bf16.vlgmr.msra.gmra.mrb[0].mxu0 %vm59_vm1, %v35_v6  ;;  %410 = vmatprep.subr.bf16.mxu1 %v477_v1 }
   0xa   :  { %426 = vmatprep.mubr.msk.bf16.mxu0 %vm478_vm0, %v477_v1 }
   0xb   :  { %14 = vsyncpa [#allocation3], 0  ;;  %v445_v7 = vld [vmem:[%s620_s3 + $0x10] sm:$0xff]   ;;  %v446_v8 = vld [vmem:[%s620_s3 + $0x18] sm:$0xff]   ;;  %vm146_vm3 = vcmask 523264   ;;  %vm346_vm6 = vcmask 130048  }
   0xc   :  { %411 = vmatpush3.bf16.msra.mxu1 %v445_v7  ;;  %v447_v9 = vld [vmem:[%s622_s5] sm:$0xff]   ;;  %v448_v10 = vld [vmem:[%s622_s5 + $0x8] sm:$0xff]   ;;  %v449_v20 = vld [vmem:[%s622_s5 + $0x10] sm:$0xff]  }
   0xd   :  { %412 = vmatprep.subr.bf16.mxu1 %v477_v1  ;;  %419 = vmatpush3.bf16.msra.mxu0 %v447_v9  ;;  %v362_v11 = vld [vmem:[%s619_s2] ss:$0 sm:$0xff]  ;;  %v450_v21 = vld [vmem:[%s622_s5 + $0x18] sm:$0xff]   ;;  %v452_v32 = vld [vmem:[%s624_s7 + $0x8] sm:$0xff]  }
   0xe   :  { %420 = vmatprep.subr.bf16.mxu0 %v477_v1  ;;  %v366_v22 = vld [vmem:[%s621_s4] ss:$0 sm:$0xff] }
   0xf   :  { %v451_v31 = vld [vmem:[%s624_s7] sm:$0xff]   ;;  %s479_s7 = smov [#allocation2]  }
  0x10   :  { %413 = vmatpush3.bf16.msra.mxu1 %v446_v8  ;;  %v372_v33 = vld [vmem:[%s623_s6] ss:$0 sm:$0xff]  ;;  %s354_s16 = sshll.u32 %s479_s7, 4  ;;  %s355_s16 = int_to_ptr.vmem [resolvable:$true] %s354_s16 }
  0x11   :  { %430 = vmatprep.subr.bf16.mxu1 %v477_v1  ;;  %421 = vmatpush3.bf16.msra.mxu0 %v448_v10  ;;  %v378_v42 = vld [vmem:[%s625_s8] ss:$0 sm:$0xff]  ;;  %s453_s6 = scalar_lea.vmem %s355_s16, 128  ;;  %p458_p1 = scmp.lt.s32.totalorder %s355_s16, %s355_s16 }
  0x12   :  { %422 = vmatprep.subr.bf16.mxu0 %v477_v1  ;;  %p454_p0 = scmp.ne.s32.totalorder %s355_s16, %s453_s6  ;;  %p459_p2 = scmp.lt.s32.totalorder %s453_s6, %s453_s6 }
  0x14   :  { %p460_p3 = por %p459_p2, %p458_p1 }
  0x15   :  { %423 = vmatpush3.bf16.msra.mxu0 %v449_v20 }
  0x16   :  { %424 = vmatprep.subr.bf16.mxu0 %v477_v1  ;;  %p461_p4 = pnand %p460_p3, %p454_p0 }
  0x19   :  { %425 = vmatpush3.bf16.msra.mxu0 %v450_v21 }
  0xdc   :  { %v97_v12 = vpop.f32.mrb[0].mxu0 }
  0xdd   :  { %v98_v13 = vadd.f32 %v362_v11, %v97_v12  ;;  %v404_v14 = vpop.f32.mrb[1].mxu0 }
  0xde   :  { %v100_v15 = vpop.f32.mrb[2].mxu0 }
  0xdf   :  { %vm103_vm2 = vcmp.gt.f32.partialorder %v98_v13, 0.0  ;;  %v104_v16 = vmul.f32 0.1, %v98_v13  ;;  %v405_v17 = vpop.f32.mrb[3].mxu0 }
  0xe1   :  { %v105_v18 = vsel %vm103_vm2, %v98_v13, %v104_v16 }
  0xe2   :  { %v106_v19 = vpack.c.bf16 %v105_v18, %v105_v18 }
  0xe4   :  { %415 = vmatmul.mubr.msk.bf16.vlgmr.msra.gmra.mrb[0].mxu1 %vm146_vm3, %v106_v19 }
  0xe5   :  { %434 = vmatprep.mubr.msk.bf16.mxu1 %vm478_vm0, %v477_v1  ;;  %431 = vmatpush3.bf16.msra.mxu1 %v451_v31 }
  0xe6   :  { %432 = vmatprep.subr.bf16.mxu1 %v477_v1 }
  0xe9   :  { %433 = vmatpush3.bf16.msra.mxu1 %v452_v32 }
 0x1b7   :  { %v184_v23 = vpop.f32.mrb[0].mxu1 }
 0x1b8   :  { %v185_v24 = vadd.f32 %v366_v22, %v184_v23  ;;  %v416_v25 = vpop.f32.mrb[1].mxu1 }
 0x1b9   :  { %v187_v26 = vpop.f32.mrb[2].mxu1 }
 0x1ba   :  { %vm190_vm4 = vcmp.gt.f32.partialorder %v185_v24, 0.0  ;;  %v191_v27 = vmul.f32 0.1, %v185_v24  ;;  %v417_v28 = vpop.f32.mrb[3].mxu1 }
 0x1bc   :  { %v192_v29 = vsel %vm190_vm4, %v185_v24, %v191_v27 }
 0x1bd   :  { %v193_v30 = vpack.c.bf16 %v192_v29, %v192_v29 }
 0x1bf   :  { %427 = vmatmul.mubr.msk.bf16.vlgmr.msra.gmra.mrb[4].mxu0 %vm146_vm3, %v193_v30 }
 0x292   :  { %v270_v34 = vpop.f32.mrb[4].mxu0 }
 0x293   :  { %v271_v35 = vadd.f32 %v372_v33, %v270_v34  ;;  %v428_v36 = vpop.f32.mrb[5].mxu0 }
 0x294   :  { %v273_v37 = vpop.f32.mrb[6].mxu0 }
 0x295   :  { %vm276_vm5 = vcmp.gt.f32.partialorder %v271_v35, 0.0  ;;  %v277_v38 = vmul.f32 0.1, %v271_v35  ;;  %v429_v39 = vpop.f32.mrb[7].mxu0 }
 0x297   :  { %v278_v40 = vsel %vm276_vm5, %v271_v35, %v277_v38 }
 0x298   :  { %v279_v41 = vpack.c.bf16 %v278_v40, %v278_v40 }
 0x29a   :  { %435 = vmatmul.mubr.msk.bf16.vlgmr.msra.gmra.mrb[4].mxu1 %vm59_vm1, %v279_v41 }
 0x36d   :  { %v340_v43 = vpop.f32.mrb[4].mxu1 }
 0x36e   :  { %v341_v44 = vadd.f32 %v378_v42, %v340_v43  ;;  %v436_v45 = vpop.f32.mrb[5].mxu1 }
 0x36f   :  { %v343_v46 = vpop.f32.mrb[6].mxu1 }
 0x370   :  { %v437_v47 = vpop.f32.mrb[7].mxu1  ;;  %347 = vst.msk [vmem:[#allocation2] sm:$0xff] %vm346_vm6, %v341_v44 }
 0x371   :  { %464 = shalt.err (!%p461_p4)
}
 0x372   :  { %s465_s8 = scalar_lea.hbm %s626_s9, 128 }
 0x373   :  { %p466_p5 = scmp.ne.s32.totalorder %s626_s9, %s465_s8  ;;  %p469_p6 = scmp.lt.u32.totalorder %s465_s8, %s626_s9 }
 0x375   :  { %p471_p7 = pnand %p469_p6, %p466_p5 }
 0x377   :  { %474 = shalt.err (!%p471_p7)
}
 0x378   :  { %357 = dma.vmem_to_hbm [thread:$0]  %s355_s16, 128, %s626_s9, [#allocation3]  }
 0x379   :  { %475 = dma.done.wait [#allocation3], 128  }
 0x37a   :  { %476 = vsyncadd [#allocation3], 4294967168 }
 0x37b   :  { %361 = vsyncpa [#allocation3], 1 }

</bundles_post_ra>
